<compile_context>
chip_gen: v7x
topology: tpu7x:2x2x1
jax: 0.10.0
libtpu: 0.0.40
codegen_flags: <defaults>
</compile_context>

<pallas_src>
import functools

import jax
import jax.numpy as jnp
from jax import lax
from jax.experimental import pallas as pl
from jax.experimental.pallas import tpu as pltpu


# --------------------------------------------------------------------------- #
# Kernel bodies
# --------------------------------------------------------------------------- #
def _layernorm_logits(x_ref, gamma_ref, beta_ref, mk_ref, eps):
    """channels_first LayerNorm over C, then logits^T = mk @ y on a (C, Nt) tile.

    Returns float32 (S, Nt).
    """
    x = x_ref[...].astype(jnp.float32)                      # (C, Nt)
    mu = jnp.mean(x, axis=0, keepdims=True)                 # (1, Nt)
    xc = x - mu
    var = jnp.mean(xc * xc, axis=0, keepdims=True)          # (1, Nt)  biased
    y = xc * lax.rsqrt(var + eps)
    y = y * gamma_ref[...] + beta_ref[...]                   # (C, 1) bcast over lanes
    return jnp.dot(mk_ref[...], y.astype(mk_ref.dtype),      # (S, C) @ (C, Nt)
                   preferred_element_type=jnp.float32)        # -> (S, Nt) f32


def _ea_kernel_fused(x_ref, gamma_ref, beta_ref, mk_ref, mv_ref, o_ref, *, eps):
    """Single-pass kernel: the whole token axis N is resident in VMEM."""
    logits = _layernorm_logits(x_ref, gamma_ref, beta_ref, mk_ref, eps)   # (S, N)

    # softmax over the token axis == per-row softmax of logits^T (lane reduce)
    m = jnp.max(logits, axis=-1, keepdims=True)               # (S, 1)
    e = jnp.exp(logits - m)                                    # (S, N)  EUP
    cs = jnp.sum(e, axis=-1, keepdims=True)                    # (S, 1)
    p = e * pl.reciprocal(cs, approx=True)                     # (S, N)  column softmax

    # Renormalisation over S is folded into a per-token (1, N) scale applied to
    # the (C, N) matmul output instead of the (S, N) attention (identical math).
    rowsum = jnp.sum(p, axis=0, keepdims=True)                 # (1, N)
    out = jnp.dot(mv_ref[...], p.astype(mv_ref.dtype),         # (C, S) @ (S, N)
                  preferred_element_type=jnp.float32)           # -> (C, N) f32
    rr = pl.reciprocal(rowsum, approx=True)                     # (1, N)  EUP

    # Residual added in the I/O dtype; no f32 copy of x kept live across matmuls.
    o_ref[...] = (out * rr).astype(o_ref.dtype) + x_ref[...]


def _ea_kernel_streamed(x_ref, gamma_ref, beta_ref, mk_ref, mv_ref, o_ref,
                        m_scr, cs_scr, *, eps):
    """Two-pass streaming kernel over N tiles.

    grid = (batch, pass, n_tile).  Pass 0 streams the tiles accumulating the
    per-column running max / sum-exp; pass 1 recomputes the logits, applies the
    softmax (1/colsum folded into the exp shift), runs the second matmul and
    stores output + residual.
    """
    pass_id = pl.program_id(1)
    n_id = pl.program_id(2)

    logits = _layernorm_logits(x_ref, gamma_ref, beta_ref, mk_ref, eps)   # (S, Nt)

    @pl.when(pass_id == 0)
    def _stats():
        t_max = jnp.max(logits, axis=-1, keepdims=True)                    # (S, 1)

        @pl.when(n_id == 0)
        def _init():
            m_scr[...] = t_max
            cs_scr[...] = jnp.sum(jnp.exp(logits - t_max), axis=-1, keepdims=True)

        @pl.when(n_id > 0)
        def _update():
            m_old = m_scr[...]
            m_new = jnp.maximum(m_old, t_max)
            cs_scr[...] = (cs_scr[...] * jnp.exp(m_old - m_new)
                           + jnp.sum(jnp.exp(logits - m_new), axis=-1, keepdims=True))
            m_scr[...] = m_new

    @pl.when(pass_id == 1)
    def _apply():
        # 1/colsum folded into the shift: exp(l - m - log cs) == exp(l - m)/cs,
        # so the column softmax costs zero extra wide VPU multiplies here.
        shift = m_scr[...] + jnp.log(cs_scr[...])             # (S, 1)
        p = jnp.exp(logits - shift)                           # (S, Nt)
        rowsum = jnp.sum(p, axis=0, keepdims=True)            # (1, Nt)
        out = jnp.dot(mv_ref[...], p.astype(mv_ref.dtype),
                      preferred_element_type=jnp.float32)     # (C, Nt)
        rr = pl.reciprocal(rowsum, approx=True)
        o_ref[...] = (out * rr).astype(o_ref.dtype) + x_ref[...]


# --------------------------------------------------------------------------- #
# Wrapper
# --------------------------------------------------------------------------- #
def _tpu_vmem_capacity_bytes(default=64 << 20):
    """Physical per-core VMEM (v5e/v6e: 128 MiB, v7x: 64 MiB); safe fallback."""
    try:
        info = pltpu.get_tpu_info()
        cap = int(getattr(info, "vmem_capacity_bytes", 0))
        return cap if cap > 0 else default
    except Exception:
        return default


def _pick_n_tile(n, per_token_bytes, budget_bytes):
    """Largest lane-dense (multiple of 128) divisor of the token axis that fits."""
    if n * per_token_bytes <= budget_bytes or n <= 128:
        return n
    t = min(max(budget_bytes // per_token_bytes, 128) // 128, n // 128) * 128
    while t >= 128:
        if n % t == 0:
            return t
        t -= 128
    # TODO(synk): no 128-aligned divisor of N fits the budget; would need
    # ragged / zero-padded N tiles.  Fall back to the full token axis.
    return n


def external_attention(x_nchw, gamma, beta, mk_w, mv_w, *, eps=1e-6,
                       matmul_dtype=jnp.bfloat16, n_tile=None):
    """ExternalAttention forward.

    x_nchw: (B, C, H, W); gamma/beta: (C,); mk_w: (S, C); mv_w: (C, S).
    matmul_dtype: dtype both MXU matmuls run in (None -> weight dtype);
      LayerNorm / softmax statistics and accumulation stay float32.
    """
    B, C, H, W = x_nchw.shape
    assert H == W, "H must == W"
    N = H * W
    S, Cw = mk_w.shape
    assert Cw == C and mv_w.shape == (C, S)

    # Channels-first all the way: only free reshapes here (no HBM transposes);
    # inside the kernel the token axis N sits on the 128-lane axis.
    x_bcn = x_nchw.reshape(B, C, N)
    g_c1 = gamma.reshape(C, 1).astype(jnp.float32)
    b_c1 = beta.reshape(C, 1).astype(jnp.float32)
    md = jnp.dtype(matmul_dtype) if matmul_dtype is not None else jnp.dtype(mk_w.dtype)
    mk = mk_w.astype(md)        # (S, C) used as-is: logits^T = mk @ y
    mv = mv_w.astype(md)        # (C, S) used as-is: out^T   = mv @ p

    # --- generation-aware VMEM budgeting ------------------------------------
    in_bytes = x_bcn.dtype.itemsize
    md_bytes = md.itemsize
    # Worst-phase bytes per token column: double-buffered x/out blocks + f32
    # temporaries (x, y, out / logits, p) + matmul-dtype casts of y and p.
    per_token = (4 * C * in_bytes
                 + (3 * C + 2 * S) * 4
                 + (C + S) * md_bytes)
    fixed = 2 * 2 * S * C * md_bytes + 4 * C * 4 + 8 * S * 4 + (256 << 10)
    vmem_cap = _tpu_vmem_capacity_bytes()
    budget = vmem_cap * 6 // 10              # headroom for Mosaic internal scratch

    if n_tile is None:
        n_tile = _pick_n_tile(N, per_token, max(budget - fixed, 1 << 20))
    assert N % n_tile == 0 and (n_tile == N or n_tile % 128 == 0)
    grid_n = N // n_tile

    vmem_est = fixed + n_tile * per_token
    compiler_kwargs = {}
    if vmem_est > (16 << 20):                # v5e default scoped limit
        compiler_kwargs["vmem_limit_bytes"] = min(int(vmem_est * 3 // 2),
                                                  int(vmem_cap * 85 // 100))

    # NOTE: gamma/beta/mk/mv have constant index maps and a tiny footprint at
    # these C/S.  TODO(synk): single-buffer them (pipeline_mode=pl.Buffered(1))
    # if C*S grows enough for the duplicate buffer to matter.

    out_shape = jax.ShapeDtypeStruct((B, C, N), x_bcn.dtype)

    if grid_n == 1:
        # Fused single-pass kernel: whole token axis resident, grid over batch.
        out_bcn = pl.pallas_call(
            functools.partial(_ea_kernel_fused, eps=eps),
            out_shape=out_shape,
            grid_spec=pltpu.PrefetchScalarGridSpec(
                num_scalar_prefetch=0,
                grid=(B,),
                in_specs=[
                    pl.BlockSpec((None, C, N), lambda b: (b, 0, 0)),   # x (B,C,N)
                    pl.BlockSpec((C, 1), lambda b: (0, 0)),            # gamma
                    pl.BlockSpec((C, 1), lambda b: (0, 0)),            # beta
                    pl.BlockSpec((S, C), lambda b: (0, 0)),            # mk
                    pl.BlockSpec((C, S), lambda b: (0, 0)),            # mv
                ],
                out_specs=pl.BlockSpec((None, C, N), lambda b: (b, 0, 0)),
            ),
            compiler_params=pltpu.CompilerParams(
                dimension_semantics=("parallel",), **compiler_kwargs),
        )(x_bcn, g_c1, b_c1, mk, mv)
    else:
        # Streaming two-pass column softmax over N tiles (used once the fused
        # working set exceeds the VMEM budget — v7x's 64 MiB hits first).
        out_bcn = pl.pallas_call(
            functools.partial(_ea_kernel_streamed, eps=eps),
            out_shape=out_shape,
            grid_spec=pltpu.PrefetchScalarGridSpec(
                num_scalar_prefetch=0,
                grid=(B, 2, grid_n),
                in_specs=[
                    pl.BlockSpec((None, C, n_tile), lambda b, p, n: (b, 0, n)),
                    pl.BlockSpec((C, 1), lambda b, p, n: (0, 0)),
                    pl.BlockSpec((C, 1), lambda b, p, n: (0, 0)),
                    pl.BlockSpec((S, C), lambda b, p, n: (0, 0)),
                    pl.BlockSpec((C, S), lambda b, p, n: (0, 0)),
                ],
                # Pass 0 never writes; park its (unwritten) output buffer on the
                # block that pass 1 step 0 fully overwrites, so no block index
                # is ever revisited after being left and no garbage hits HBM.
                out_specs=pl.BlockSpec((None, C, n_tile),
                                       lambda b, p, n: (b, 0, n * p)),
                scratch_shapes=[pltpu.VMEM((S, 1), jnp.float32),   # running max
                                pltpu.VMEM((S, 1), jnp.float32)],  # running sum-exp
            ),
            compiler_params=pltpu.CompilerParams(
                dimension_semantics=("parallel", "arbitrary", "arbitrary"),
                **compiler_kwargs),
        )(x_bcn, g_c1, b_c1, mk, mv)

    return out_bcn.reshape(B, C, H, W)


# --------------------------------------------------------------------------- #
# Reference + demo
# --------------------------------------------------------------------------- #
def _reference(x_nchw, gamma, beta, mk_w, mv_w, eps=1e-6):
    """Pure-JAX reference mirroring the PyTorch forward (f32)."""
    B, C, H, W = x_nchw.shape
    u = jnp.mean(x_nchw, axis=1, keepdims=True)
    s = jnp.mean((x_nchw - u) ** 2, axis=1, keepdims=True)
    y = (x_nchw - u) / jnp.sqrt(s + eps)
    y = gamma[None, :, None, None] * y + beta[None, :, None, None]
    y3 = jnp.transpose(y, (0, 2, 3, 1)).reshape(B, H * W, C)
    attn = jnp.einsum('bnc,sc->bns', y3, mk_w)
    attn = jax.nn.softmax(attn, axis=1)
    attn = attn / jnp.sum(attn, axis=2, keepdims=True)
    out = jnp.einsum('bns,cs->bnc', attn, mv_w)
    out = jnp.transpose(out.reshape(B, H, W, C), (0, 3, 1, 2))
    return out + x_nchw


if __name__ == "__main__":
    key = jax.random.PRNGKey(0)
    B, C, H, W, S = 2, 32, 16, 16, 64

    k_x, k_mk, k_mv = jax.random.split(key, 3)
    x = jax.random.normal(k_x, (B, C, H, W), dtype=jnp.float32)

    # Module init: LayerNorm weight=1, bias=0; mk/mv ~ N(0, 0.001^2), no bias.
    gamma = jnp.ones((C,), dtype=jnp.float32)
    beta = jnp.zeros((C,), dtype=jnp.float32)
    mk_w = 0.001 * jax.random.normal(k_mk, (S, C), dtype=jnp.float32)
    mv_w = 0.001 * jax.random.normal(k_mv, (C, S), dtype=jnp.float32)

    ref = _reference(x, gamma, beta, mk_w, mv_w)

    # Fused single-pass path (token axis resident in VMEM).
    out = jax.block_until_ready(external_attention(x, gamma, beta, mk_w, mv_w))
    assert out.shape == (B, C, H, W)
    assert jnp.allclose(out, ref, atol=1e-5, rtol=1e-5), "fused path mismatch"

    # Streaming two-pass path (token axis tiled; used at large N / small VMEM).
    out2 = jax.block_until_ready(
        external_attention(x, gamma, beta, mk_w, mv_w, n_tile=128))
    assert jnp.allclose(out2, ref, atol=1e-5, rtol=1e-5), "streamed path mismatch"

    print("KERNEL_OK")
</pallas_src>

<mosaic_0001>
module attributes {stable_mosaic.version = 11 : i64} {
  func.func @_ea_kernel_fused(%arg0: i32, %arg1: memref<1x32x256xf32, #tpu.memory_space<vmem>>, %arg2: memref<32x1xf32, #tpu.memory_space<vmem>>, %arg3: memref<32x1xf32, #tpu.memory_space<vmem>>, %arg4: memref<64x32xbf16, #tpu.memory_space<vmem>>, %arg5: memref<32x64xbf16, #tpu.memory_space<vmem>>, %arg6: memref<1x32x256xf32, #tpu.memory_space<vmem>>) attributes {dimension_semantics = [#tpu.dimension_semantics<parallel>], iteration_bounds = array<i64: 2>, scalar_prefetch = 0 : i64, scratch_operands = 0 : i64, tpu.core_type = #tpu.core_type<tc>, window_params = [{transform_indices = @transform_0, window_bounds = array<i64: 1, 32, 256>}, {pipeline_mode = #tpu.pipeline_mode<synchronous>, transform_indices = @transform_1, window_bounds = array<i64: 32, 1>}, {pipeline_mode = #tpu.pipeline_mode<synchronous>, transform_indices = @transform_2, window_bounds = array<i64: 32, 1>}, {pipeline_mode = #tpu.pipeline_mode<synchronous>, transform_indices = @transform_3, window_bounds = array<i64: 64, 32>}, {pipeline_mode = #tpu.pipeline_mode<synchronous>, transform_indices = @transform_4, window_bounds = array<i64: 32, 64>}, {transform_indices = @transform_5, window_bounds = array<i64: 1, 32, 256>}]} {
    %c0 = arith.constant 0 : index
    %c0_0 = arith.constant 0 : index
    %c0_1 = arith.constant 0 : index
    %0 = vector.load %arg1[%c0, %c0_0, %c0_1] : memref<1x32x256xf32, #tpu.memory_space<vmem>>, vector<1x32x256xf32>
    %1 = vector.shape_cast %0 : vector<1x32x256xf32> to vector<32x256xf32>
    %cst = arith.constant dense<0.000000e+00> : vector<256xf32>
    %2 = vector.multi_reduction <add>, %1, %cst [0] : vector<32x256xf32> to vector<256xf32>
    %3 = vector.shape_cast %2 : vector<256xf32> to vector<1x256xf32>
    %cst_2 = arith.constant 3.200000e+01 : f32
    %4 = vector.broadcast %cst_2 : f32 to vector<1x256xf32>
    %5 = arith.divf %3, %4 : vector<1x256xf32>
    %6 = vector.broadcast %5 : vector<1x256xf32> to vector<32x256xf32>
    %7 = arith.subf %1, %6 : vector<32x256xf32>
    %8 = arith.mulf %7, %7 : vector<32x256xf32>
    %cst_3 = arith.constant dense<0.000000e+00> : vector<256xf32>
    %9 = vector.multi_reduction <add>, %8, %cst_3 [0] : vector<32x256xf32> to vector<256xf32>
    %10 = vector.shape_cast %9 : vector<256xf32> to vector<1x256xf32>
    %cst_4 = arith.constant 3.200000e+01 : f32
    %11 = vector.broadcast %cst_4 : f32 to vector<1x256xf32>
    %12 = arith.divf %10, %11 : vector<1x256xf32>
    %cst_5 = arith.constant 9.99999997E-7 : f32
    %13 = vector.broadcast %cst_5 : f32 to vector<1x256xf32>
    %14 = arith.addf %12, %13 : vector<1x256xf32>
    %15 = math.rsqrt %14 : vector<1x256xf32>
    %16 = vector.broadcast %15 : vector<1x256xf32> to vector<32x256xf32>
    %17 = arith.mulf %7, %16 : vector<32x256xf32>
    %c0_6 = arith.constant 0 : index
    %c0_7 = arith.constant 0 : index
    %18 = vector.load %arg2[%c0_6, %c0_7] : memref<32x1xf32, #tpu.memory_space<vmem>>, vector<32x1xf32>
    %19 = vector.broadcast %18 : vector<32x1xf32> to vector<32x256xf32>
    %20 = arith.mulf %17, %19 : vector<32x256xf32>
    %c0_8 = arith.constant 0 : index
    %c0_9 = arith.constant 0 : index
    %21 = vector.load %arg3[%c0_8, %c0_9] : memref<32x1xf32, #tpu.memory_space<vmem>>, vector<32x1xf32>
    %22 = vector.broadcast %21 : vector<32x1xf32> to vector<32x256xf32>
    %23 = arith.addf %20, %22 : vector<32x256xf32>
    %c0_10 = arith.constant 0 : index
    %c0_11 = arith.constant 0 : index
    %24 = vector.load %arg4[%c0_10, %c0_11] : memref<64x32xbf16, #tpu.memory_space<vmem>>, vector<64x32xbf16>
    %25 = arith.truncf %23 : vector<32x256xf32> to vector<32x256xbf16>
    %cst_12 = arith.constant dense<0.000000e+00> : vector<64x256xf32>
    %26 = tpu.matmul %24, %25, %cst_12 {dimension_numbers = #tpu.dot_dimension_numbers<[1], [0], [0], [1], [0, 0, 1, 1], [], []>} : vector<64x32xbf16>, vector<32x256xbf16>, vector<64x256xf32> -> vector<64x256xf32>
    %cst_13 = arith.constant dense<0xFF800000> : vector<64xf32>
    %27 = vector.multi_reduction <maximumf>, %26, %cst_13 [1] : vector<64x256xf32> to vector<64xf32>
    %28 = vector.shape_cast %27 : vector<64xf32> to vector<64x1xf32>
    %29 = vector.broadcast %28 : vector<64x1xf32> to vector<64x256xf32>
    %30 = arith.subf %26, %29 : vector<64x256xf32>
    %31 = math.exp %30 : vector<64x256xf32>
    %cst_14 = arith.constant dense<0.000000e+00> : vector<64xf32>
    %32 = vector.multi_reduction <add>, %31, %cst_14 [1] : vector<64x256xf32> to vector<64xf32>
    %33 = vector.shape_cast %32 : vector<64xf32> to vector<64x1xf32>
    %34 = tpu.reciprocal %33 {approx = true} : vector<64x1xf32> -> vector<64x1xf32>
    %35 = vector.broadcast %34 : vector<64x1xf32> to vector<64x256xf32>
    %36 = arith.mulf %31, %35 : vector<64x256xf32>
    %cst_15 = arith.constant dense<0.000000e+00> : vector<256xf32>
    %37 = vector.multi_reduction <add>, %36, %cst_15 [0] : vector<64x256xf32> to vector<256xf32>
    %38 = vector.shape_cast %37 : vector<256xf32> to vector<1x256xf32>
    %c0_16 = arith.constant 0 : index
    %c0_17 = arith.constant 0 : index
    %39 = vector.load %arg5[%c0_16, %c0_17] : memref<32x64xbf16, #tpu.memory_space<vmem>>, vector<32x64xbf16>
    %40 = arith.truncf %36 : vector<64x256xf32> to vector<64x256xbf16>
    %cst_18 = arith.constant dense<0.000000e+00> : vector<32x256xf32>
    %41 = tpu.matmul %39, %40, %cst_18 {dimension_numbers = #tpu.dot_dimension_numbers<[1], [0], [0], [1], [0, 0, 1, 1], [], []>} : vector<32x64xbf16>, vector<64x256xbf16>, vector<32x256xf32> -> vector<32x256xf32>
    %42 = tpu.reciprocal %38 {approx = true} : vector<1x256xf32> -> vector<1x256xf32>
    %43 = vector.broadcast %42 : vector<1x256xf32> to vector<32x256xf32>
    %44 = arith.mulf %41, %43 : vector<32x256xf32>
    %c0_19 = arith.constant 0 : index
    %c0_20 = arith.constant 0 : index
    %c0_21 = arith.constant 0 : index
    %45 = vector.load %arg1[%c0_19, %c0_20, %c0_21] : memref<1x32x256xf32, #tpu.memory_space<vmem>>, vector<1x32x256xf32>
    %46 = vector.shape_cast %45 : vector<1x32x256xf32> to vector<32x256xf32>
    %47 = arith.addf %44, %46 : vector<32x256xf32>
    %c0_22 = arith.constant 0 : index
    %c0_23 = arith.constant 0 : index
    %c0_24 = arith.constant 0 : index
    %48 = vector.load %arg6[%c0_22, %c0_23, %c0_24] : memref<1x32x256xf32, #tpu.memory_space<vmem>>, vector<1x32x256xf32>
    %49 = vector.shape_cast %48 : vector<1x32x256xf32> to vector<32x256xf32>
    %50 = vector.shape_cast %47 : vector<32x256xf32> to vector<1x32x256xf32>
    tpu.vector_store %arg6[%c0_22, %c0_23, %c0_24], %50 {strides = array<i32>} : memref<1x32x256xf32, #tpu.memory_space<vmem>>, vector<1x32x256xf32>,
    return
  }
  func.func @transform_0(%arg0: i32) -> (i32, i32, i32) {
    %c0_i32 = arith.constant 0 : i32
    %c0_i32_0 = arith.constant 0 : i32
    %c0_i32_1 = arith.constant 0 : i32
    return %arg0, %c0_i32, %c0_i32_0 : i32, i32, i32
  }
  func.func @transform_1(%arg0: i32) -> (i32, i32) {
    %c0_i32 = arith.constant 0 : i32
    %c0_i32_0 = arith.constant 0 : i32
    %c0_i32_1 = arith.constant 0 : i32
    return %c0_i32, %c0_i32_0 : i32, i32
  }
  func.func @transform_2(%arg0: i32) -> (i32, i32) {
    %c0_i32 = arith.constant 0 : i32
    %c0_i32_0 = arith.constant 0 : i32
    %c0_i32_1 = arith.constant 0 : i32
    return %c0_i32, %c0_i32_0 : i32, i32
  }
  func.func @transform_3(%arg0: i32) -> (i32, i32) {
    %c0_i32 = arith.constant 0 : i32
    %c0_i32_0 = arith.constant 0 : i32
    %c0_i32_1 = arith.constant 0 : i32
    return %c0_i32, %c0_i32_0 : i32, i32
  }
  func.func @transform_4(%arg0: i32) -> (i32, i32) {
    %c0_i32 = arith.constant 0 : i32
    %c0_i32_0 = arith.constant 0 : i32
    %c0_i32_1 = arith.constant 0 : i32
    return %c0_i32, %c0_i32_0 : i32, i32
  }
  func.func @transform_5(%arg0: i32) -> (i32, i32, i32) {
    %c0_i32 = arith.constant 0 : i32
    %c0_i32_0 = arith.constant 0 : i32
    %c0_i32_1 = arith.constant 0 : i32
    return %arg0, %c0_i32, %c0_i32_0 : i32, i32, i32
  }
}

</mosaic_0001>

<bundles_post_ra>
// kernel: tpu_custom_call.1
= control target key start
LH: loop header
LB: loop body
LE: loop exit
PB: predicated region body
PF: predicated region fallthrough
CT: control target
= control target key end

     0   :  { %10 = vsyncpa [#allocation3], 0  ;;  %s1444_s0 = inlined_call_operand.hbm [shape: f32[2,32,256], index: 0, kind: input, shape index: {}]   ;;  %s1445_s1 = inlined_call_operand.vmem [shape: f32[32,1], index: 1, kind: input, shape index: {}]   ;;  %s1446_s2 = inlined_call_operand.vmem [shape: f32[32,1], index: 2, kind: input, shape index: {}]   ;;  %s1447_s3 = inlined_call_operand.vmem [shape: bf16[64,32], index: 3, kind: input, shape index: {}]   ;;  %s1448_s4 = inlined_call_operand.vmem [shape: bf16[32,64], index: 4, kind: input, shape index: {}]   ;;  %s1449_s5 = inlined_call_operand.hbm [shape: f32[2,32,256], index: 5, kind: output, shape index: {}]  }
   0x1   :  { %12 = vsyncpa [#allocation3 + $0x1], 0 }
   0x2   :  { %13 = vsyncpa [#allocation4], 0 }
   0x3   :  { %15 = vsyncpa [#allocation4 + $0x1], 0  ;;  %s1122_s18 = smov 0   ;;  %s1124_s19 = smov 0  }
   0x4   :  { %s1126_s20 = smov 0   ;;  %s1128_s21 = smov 0  }
   0x5 LB: > { %s1143_s22 = sadd.s32 4294967295, %s1083_s21   ;;  %s844_s23 = sadd.s32 4294967294, %s1083_s21   ;;  %s1083_s21 = sphi %s1128_s21, %s1462_s21   ;;  %s1079_s20 = sphi %s1126_s20, %s1461_s20   ;;  %s1075_s19 = sphi %s1124_s19, %s1460_s19   ;;  %s1071_s18 = sphi %s1122_s18, %s1459_s18  }
   0x6   : > { %s1147_s24 = sadd.s32 1, %s1083_s21   ;;  %s28_s25 = sadd.s32 1, %s1079_s20 }
   0x7   : > { %s25_s26 = ssub.s32 %s1083_s21, %s1147_s24  ;;  %p35_p0 = scmp.ne.s32.totalorder %s1079_s20, %s1075_s19 }
   0x8   : > { %p26_p1 = scmp.eq.s32.totalorder %s25_s26, 0  ;;  %p36_p2 = scmp.eq.s32.totalorder %s1083_s21, 0 }
   0x9   : > { %p41_p3 = scmp.ne.s32.totalorder %s1075_s19, %s1071_s18  ;;  %p42_p4 = scmp.eq.s32.totalorder %s1143_s22, 0 }
   0xa   : > { %s1159_s27 = scalar_select %p26_p1, %s1079_s20, %s28_s25  }
   0xb   : > { %p1161_p5 = por %p36_p2, %p35_p0  ;;  %p1165_p6 = por %p42_p4, %p41_p3 }
   0xc   : > { %p149_p7 = scmp.eq.s32.totalorder %s1143_s22, 1  ;;  %p155_p8 = scmp.eq.s32.totalorder %s844_s23, 1 }
   0xd   : > { %p884_p10 = scmp.lt.s32.totalorder %s1083_s21, 2  ;;  %s187_s7 = sand.u32 1, %s1079_s20  }
   0xe   : > { %p1172_p11 = por %p149_p7, %p35_p0  ;;  %p1176_p12 = por %p155_p8, %p41_p3 }
   0xf   : > { %s870_s8 = sshll.u32 %s1083_s21, 10  ;;  %s847_s9 = sshll.u32 %s187_s7, 6 }
  0x10   : > { %s1453_s30 = scalar_select %p1172_p11, 1, 0 }
  0x11   : > { %s1454_s6 = scalar_select %p1176_p12, 1, 0 }
  0x12   : > { %s1185_s12 = scalar_lea.hbm %s1444_s0, %s870_s8  ;;  %s191_s13 = scalar_lea.vmem [#allocation2], %s847_s9 }
  0x13   : > { %s198_s14 = sshll.u32 %s191_s13, 4  ;;  %p1189_p13 = pnand %p884_p10, %p1161_p5  ;;  %s1193_s14 = int_to_ptr.vmem [resolvable:$true] %s198_s14 }
  0x14   : > { %s1195_s16 = scalar_lea.sflag [#allocation3], %s187_s7  ;;  %s987_s17 = scalar_lea.hbm %s1185_s12, 1024 }
  0x15   : > { %p988_p0 = scmp.ne.s32.totalorder %s1185_s12, %s987_s17  ;;  %p989_p1 = pneg %p1189_p13 }
  0x16   : > { %s992_s26 = scalar_lea.hbm %s1444_s0, 2048  ;;  %p993_p4 = scmp.lt.u32.totalorder %s1185_s12, %s1444_s0 }
  0x17   : > { %p990_p2 = pnand %p989_p1, %p988_p0  ;;  %p994_p5 = scmp.lt.u32.totalorder %s992_s26, %s987_s17 }
  0x18   : > { %p996_p8 = scmp.lt.u32.totalorder %s987_s17, %s1185_s12 }
  0x19   : > { %p991_p3 = pneg %p990_p2  ;;  %p995_p7 = por %p994_p5, %p993_p4 }
  0x1b   : > { %p997_p10 = por %p996_p8, %p995_p7 }
  0x1d   : > { %p998_p9 = pnand %p997_p10, %p991_p3 }
  0x1f   : > { %1001 = shalt.err (!%p998_p9)
}
  0x20   : > { %s1002_s7 = scalar_lea.vmem %s1193_s14, 1024  ;;  %s1085_s9 = smov [#allocation2]  }
  0x21   : > { %p1003_p0 = scmp.ne.s32.totalorder %s1193_s14, %s1002_s7  ;;  %s1007_s10 = sshll.u32 %s1085_s9, 4  ;;  %s1008_s10 = int_to_ptr.vmem [resolvable:$false] %s1007_s10 }
  0x22   : > { %s1009_s11 = scalar_lea.vmem %s1008_s10, 2048  ;;  %p1010_p11 = scmp.lt.s32.totalorder %s1193_s14, %s1008_s10 }
  0x23   : > { %p1005_p2 = pnand %p1003_p0, %p989_p1  ;;  %p1011_p4 = scmp.lt.s32.totalorder %s1009_s11, %s1002_s7 }
  0x25   : > { %p1006_p12 = pneg %p1005_p2  ;;  %p1012_p5 = por %p1011_p4, %p1010_p11 }
  0x27   : > { %p1013_p7 = pnand %p1012_p5, %p1006_p12 }
  0x29   : > { %1016 = shalt.err (!%p1013_p7)
}
  0x2a   : > { %s1086_s13 = smov 256   ;;  %s1087_s17 = smov 16  }
  0x2b   : > { %879 = dma.hbm_to_vmem [thread:$0]  (!%p1189_p13), %s1185_s12, 1024, %s1193_s14, %s1195_s16, %s1086_s13, %s1086_s13, %s1087_s17  }
  0x2c   : > { %p850_p9 = scmp.ge.s32.totalorder %s1083_s21, 1  ;;  %p206_p1 = scmp.lt.s32.totalorder %s1083_s21, 3 }
  0x2e   : > { %p207_p3 = pnand %p850_p9, %p206_p1 }
  0x2f   : > { %s1226_s23 = sand.u32 (!%p207_p3), 1, %s1075_s19  }
  0x30   : > { %210 = sbr.rel (%p207_p3) target bundleno = 1011 (0x3f3), region = 40  ;;  %s851_s25 = sshll.u32 (!%p207_p3), %s1226_s23, 6 }
  0x31   : > { %s213_s26 = scalar_lea.sflag (!%p207_p3), [#allocation3], %s1226_s23  ;;  %s1232_s28 = scalar_lea.vmem (!%p207_p3), [#allocation2], %s851_s25 }
  0x37   : > { %1062 = dma.done.wait (%p1165_p6), %s213_s26, 1024  }
  0x38   : > { %1064 = vsyncadd (%p1165_p6), %s213_s26, 4294966272  ;;  %v1088_v0 = vmov 0   ;;  %v353_v1 = vld [vmem:[%s1446_s2] sm:$0xff]  ;;  %v354_v3 = vld [vmem:[%s1446_s2 + $0x8] sm:$0xff]  ;;  %vm417_vm0 = vcmask 261120   ;;  %vm671_vm1 = vcmask 523264  }
  0x39   : > { %924 = vset.pattern.permute.xlu1 %v1088_v0  ;;  %923 = vset.pattern.permute.xlu0 %v1088_v0  ;;  %v321_v2 = vld [vmem:[%s1445_s1] sm:$0xff]  ;;  %v322_v4 = vld [vmem:[%s1445_s1 + $0x8] sm:$0xff]  ;;  %v324_v5 = vld [vmem:[%s1445_s1 + $0x18] sm:$0xff]  ;;  %s242_s14 = scalar_lea.vmem [#allocation5], %s851_s25  ;;  %s758_s29 = scalar_lea.sflag [#allocation4], %s1226_s23 }
  0x3a   : > { %462 = vmatprep.mubr.bf16.mxu0 %v1088_v0  ;;  %710 = vmatprep.mubr.bf16.mxu1 %v1088_v0  ;;  %v323_v6 = vld [vmem:[%s1445_s1 + $0x10] sm:$0xff]  ;;  %v356_v7 = vld [vmem:[%s1446_s2 + $0x18] sm:$0xff]  ;;  %v1267_v9 = vld [vmem:[%s1232_s28] sm:$0xff]  ;;  %s771_s15 = sshll.u32 %s242_s14, 4  ;;  %p1456_p11 = scmp.ne.s32.totalorder %s1453_s30, 0  ;;  %s1392_s15 = int_to_ptr.vmem [resolvable:$true] %s771_s15 }
  0x3b   : > { %359 = vperm.xlu1 %924, %v353_v1   ;;  %327 = vperm.xlu0 %923, %v321_v2   ;;  %v355_v8 = vld [vmem:[%s1446_s2 + $0x10] sm:$0xff]  ;;  %v1273_v11 = vld [vmem:[%s1232_s28 + $0x8] sm:$0xff]  ;;  %v1276_v12 = vld [vmem:[%s1232_s28 + $0x18] sm:$0xff]  ;;  %s1017_s8 = scalar_lea.vmem %s1392_s15, 1024  ;;  %s1089_s7 = smov [#allocation5]  }
  0x3c   : > { %v1270_v10 = vld [vmem:[%s1232_s28 + $0x10] sm:$0xff]  ;;  %v1281_v14 = vld [vmem:[%s1232_s28 + $0x20] sm:$0xff]  ;;  %v261_v15 = vadd.f32 %v1276_v12, %v1273_v11  ;;  %v1286_v16 = vld [vmem:[%s1232_s28 + $0x28] sm:$0xff]  ;;  %p1018_p6 = scmp.ne.s32.totalorder %s1392_s15, %s1017_s8  ;;  %s1021_s9 = sshll.u32 %s1089_s7, 4  ;;  %s1022_s9 = int_to_ptr.vmem [resolvable:$false] %s1021_s9 }
  0x3d   : > { %v252_v13 = vadd.f32 %v1270_v10, %v1267_v9  ;;  %v1290_v18 = vld [vmem:[%s1232_s28 + $0x30] sm:$0xff]  ;;  %v1294_v20 = vld [vmem:[%s1232_s28 + $0x38] sm:$0xff]  ;;  %s871_s28 = sshll.u32 %s1143_s22, 10  ;;  %s1023_s10 = scalar_lea.vmem %s1022_s9, 2048 }
  0x3e   : > { %v262_v19 = vadd.f32 %v261_v15, %v1286_v16  ;;  %s1399_s22 = scalar_lea.hbm %s1449_s5, %s871_s28  ;;  %p1019_p12 = pnand %p1018_p6, %p1456_p11 }
  0x3f   : > { %364 = vperm.xlu1 %924, %v354_v3   ;;  %332 = vperm.xlu0 %923, %v322_v4   ;;  %v253_v17 = vadd.f32 %v252_v13, %v1281_v14  ;;  %p1024_p8 = scmp.lt.s32.totalorder %s1392_s15, %s1022_s9  ;;  %p1025_p10 = scmp.lt.s32.totalorder %s1023_s10, %s1017_s8 }
  0x40   : > { %v263_v22 = vadd.f32 %v262_v19, %v1294_v20  ;;  %p1020_p13 = pneg %p1019_p12 }
  0x41   : > { %v254_v21 = vadd.f32 %v253_v17, %v1290_v18  ;;  %p1026_p0 = por %p1025_p10, %p1024_p8 }
  0x42   : > { %v264_v24 = vrot.slane %v263_v22, 4 }
  0x43   : > { %342 = vperm.xlu1 %924, %v324_v5   ;;  %337 = vperm.xlu0 %923, %v323_v6   ;;  %v255_v23 = vrot.slane %v254_v21, 4  ;;  %p1027_p2 = pnand %p1026_p0, %p1020_p13 }
  0x44   : > { %v265_v26 = vadd.f32 %v264_v24, %v263_v22 }
  0x45   : > { %v256_v25 = vadd.f32 %v255_v23, %v254_v21 }
  0x46   : > { %v266_v28 = vrot.slane %v265_v26, 2 }
  0x47   : > { %374 = vperm.xlu1 %924, %v356_v7   ;;  %369 = vperm.xlu0 %923, %v355_v8   ;;  %v257_v27 = vrot.slane %v256_v25, 2 }
  0x48   : > { %v267_v30 = vadd.f32 %v266_v28, %v265_v26 }
  0x49   : > { %v258_v29 = vadd.f32 %v257_v27, %v256_v25 }
  0x4a   : > { %v268_v32 = vrot.slane %v267_v30, 1 }
  0x4b   : > { %v259_v31 = vrot.slane %v258_v29, 1 }
  0x4c   : > { %v269_v34 = vadd.f32 %v268_v32, %v267_v30 }
  0x4d   : > { %v260_v33 = vadd.f32 %v259_v31, %v258_v29 }
  0x4e   : > { %v272_v36 = vmul.f32 0.03125, %v269_v34 }
  0x4f   : > { %v271_v35 = vmul.f32 0.03125, %v260_v33 }
  0x50   : > { %v274_v39 = vsub.f32 %v1273_v11, %v272_v36  ;;  %v276_v40 = vsub.f32 %v1276_v12, %v272_v36  ;;  %v278_v44 = vsub.f32 %v1286_v16, %v272_v36  ;;  %v280_v50 = vsub.f32 %v1294_v20, %v272_v36 }
  0x51   : > { %v273_v37 = vsub.f32 %v1267_v9, %v271_v35  ;;  %v275_v38 = vsub.f32 %v1270_v10, %v271_v35  ;;  %v277_v41 = vsub.f32 %v1281_v14, %v271_v35  ;;  %v279_v47 = vsub.f32 %v1290_v18, %v271_v35 }
  0x52   : > { %v282_v45 = vmul.f32 %v274_v39, %v274_v39  ;;  %v284_v46 = vmul.f32 %v276_v40, %v276_v40  ;;  %v286_v51 = vmul.f32 %v278_v44, %v278_v44  ;;  %v288_v55 = vmul.f32 %v280_v50, %v280_v50 }
  0x53   : > { %v281_v42 = vmul.f32 %v273_v37, %v273_v37  ;;  %v283_v43 = vmul.f32 %v275_v38, %v275_v38  ;;  %v285_v48 = vmul.f32 %v277_v41, %v277_v41  ;;  %v287_v53 = vmul.f32 %v279_v47, %v279_v47 }
  0x54   : > { %v298_v52 = vadd.f32 %v284_v46, %v282_v45 }
  0x55   : > { %v289_v49 = vadd.f32 %v283_v43, %v281_v42 }
  0x56   : > { %v299_v56 = vadd.f32 %v298_v52, %v286_v51 }
  0x57   : > { %v290_v54 = vadd.f32 %v289_v49, %v285_v48 }
  0x58   : > { %v300_v58 = vadd.f32 %v299_v56, %v288_v55 }
  0x59   : > { %v291_v57 = vadd.f32 %v290_v54, %v287_v53 }
  0x5a   : > { %v301_v60 = vrot.slane %v300_v58, 4 }
  0x5b   : > { %v292_v59 = vrot.slane %v291_v57, 4 }
  0x5c   : > { %v302_v62 = vadd.f32 %v301_v60, %v300_v58  ;;  %v925_v58 = vld [vmem:[%s1447_s3] sm:$0xff]   ;;  %v927_v60 = vld [vmem:[%s1447_s3 + $0x10] sm:$0xff]  }
  0x5d   : > { %v293_v61 = vadd.f32 %v292_v59, %v291_v57  ;;  %v926_v59 = vld [vmem:[%s1447_s3 + $0x8] sm:$0xff]  }
  0x5e   : > { %v303_v1 = vrot.slane %v302_v62, 2 }
  0x5f   : > { %v294_v63 = vrot.slane %v293_v61, 2 }
  0x60   : > { %v304_v3 = vadd.f32 %v303_v1, %v302_v62 }
  0x61   : > { %v295_v2 = vadd.f32 %v294_v63, %v293_v61  ;;  %v928_v61 = vld [vmem:[%s1447_s3 + $0x18] sm:$0xff]  }
  0x62   : > { %v305_v5 = vrot.slane %v304_v3, 1 }
  0x63   : > { %v296_v4 = vrot.slane %v295_v2, 1 }
  0x64   : > { %v306_v7 = vadd.f32 %v305_v5, %v304_v3 }
  0x65   : > { %v297_v6 = vadd.f32 %v296_v4, %v295_v2 }
  0x66   : > { %v308_v13 = vmul.f32 0.03125, %v306_v7 }
  0x67   : > { %v307_v8 = vmul.f32 0.03125, %v297_v6 }
  0x68   : > { %v310_v17 = vadd.f32 1e-06, %v308_v13 }
  0x69   : > { %v309_v15 = vadd.f32 1e-06, %v307_v8 }
  0x6b   : > { %931 = vrsqrt.f32 %v309_v15 }
  0x6c   : > { %933 = vrsqrt.f32 %v310_v17 }
  0x75   : > { %v932_v19 = vpop.eup %931 }
  0x76   : > { %v934_v21 = vpop.eup %933  ;;  %v313_v24 = vmul.f32 %v932_v19, %v273_v37  ;;  %v315_v26 = vmul.f32 %v932_v19, %v275_v38  ;;  %v319_v34 = vmul.f32 %v932_v19, %v279_v47  ;;  %v317_v35 = vmul.f32 %v932_v19, %v277_v41 }
  0x77   : > { %v314_v25 = vmul.f32 %v934_v21, %v274_v39  ;;  %v316_v27 = vmul.f32 %v934_v21, %v276_v40  ;;  %v320_v36 = vmul.f32 %v934_v21, %v280_v50  ;;  %v318_v42 = vmul.f32 %v934_v21, %v278_v44 }
  0xba   : > { %v360_v22 = vpop.permute.xlu1 %359  ;;  %v328_v23 = vpop.permute.xlu0 %327 }
  0xbb   : > { %v345_v28 = vmul.f32 %v328_v23, %v313_v24  ;;  %v346_v29 = vmul.f32 %v328_v23, %v314_v25 }
  0xbd   : > { %v378_v49 = vadd.f32 %v360_v22, %v346_v29  ;;  %v377_v51 = vadd.f32 %v360_v22, %v345_v28 }
  0xbe   : > { %v365_v30 = vpop.permute.xlu1 %364  ;;  %v333_v31 = vpop.permute.xlu0 %332 }
  0xbf   : > { %v347_v32 = vmul.f32 %v333_v31, %v315_v26  ;;  %v348_v33 = vmul.f32 %v333_v31, %v316_v27 }
  0xc1   : > { %v380_v43 = vadd.f32 %v365_v30, %v348_v33  ;;  %v379_v45 = vadd.f32 %v365_v30, %v347_v32 }
  0xc2   : > { %v343_v46 = vpop.permute.xlu1 %342  ;;  %v338_v48 = vpop.permute.xlu0 %337 }
  0xc3   : > { %v394_v37 = vpack.c.bf16 %v380_v43, %v378_v49  ;;  %v393_v39 = vpack.c.bf16 %v379_v45, %v377_v51  ;;  %v351_v38 = vmul.f32 %v343_v46, %v319_v34  ;;  %v352_v40 = vmul.f32 %v343_v46, %v320_v36 }
  0xc4   : > { %v349_v52 = vmul.f32 %v338_v48, %v317_v35  ;;  %v350_v53 = vmul.f32 %v338_v48, %v318_v42 }
  0xc5   : > { %430 = vmatprep.subr.bf16.mxu0 %v394_v37 }
  0xc6   : > { %v375_v54 = vpop.permute.xlu1 %374  ;;  %v370_v55 = vpop.permute.xlu0 %369  ;;  %431 = vmatpush1.bf16.msra.mxu0 %v393_v39 }
  0xc7   : > { %v383_v56 = vadd.f32 %v375_v54, %v351_v38  ;;  %v384_v47 = vadd.f32 %v375_v54, %v352_v40  ;;  %v381_v41 = vadd.f32 %v370_v55, %v349_v52  ;;  %v382_v50 = vadd.f32 %v370_v55, %v350_v53 }
  0xc9   : > { %v395_v44 = vpack.c.bf16 %v383_v56, %v381_v41  ;;  %v396_v57 = vpack.c.bf16 %v384_v47, %v382_v50 }
  0xcb   : > { %432 = vmatprep.subr.bf16.mxu0 %v396_v57 }
  0xcc   : > { %433 = vmatpush1.bf16.msra.mxu0 %v395_v44 }
  0xcf   : > { %857 = vmatmul.mubr.msk.bf16.vlgmr.msra.gmra.mrb[0].mxu0 %vm417_vm0, %v925_v58 }
  0xd0   : > { %472 = vmatprep.mubr.bf16.mxu0 %v1088_v0 }
  0xd7   : > { %858 = vmatmul.mubr.msk.bf16.gmra.mrb[4].mxu0 %vm417_vm0, %v926_v59 }
  0xd8   : > { %482 = vmatprep.mubr.bf16.mxu0 %v1088_v0 }
  0xdf   : > { %859 = vmatmul.mubr.msk.bf16.gmra.mrb[8].mxu0 %vm417_vm0, %v927_v60 }
  0xe0   : > { %492 = vmatprep.mubr.bf16.mxu0 %v1088_v0 }
  0xe7   : > { %860 = vmatmul.mubr.msk.bf16.gmra.mrb[12].mxu0 %vm417_vm0, %v928_v61 }
 0x1a2   : > { %v464_v62 = vpop.f32.mrb[0].mxu0 }
 0x1a3   : > { %v466_v63 = vpop.f32.mrb[1].mxu0 }
 0x1a4   : > { %v468_v1 = vpop.f32.mrb[2].mxu0  ;;  %v503_v2 = vmax.f32 %v464_v62, %v466_v63 }
 0x1a5   : > { %v470_v3 = vpop.f32.mrb[3].mxu0 }
 0x1a6   : > { %504 = vmax.xlane.f32.xlu0 %v503_v2  ;;  %v506_v4 = vmax.f32 %v468_v1, %v470_v3 }
 0x1a8   : > { %507 = vmax.xlane.f32.xlu1 %v506_v4 }
 0x1aa   : > { %v474_v5 = vpop.f32.mrb[4].mxu0 }
 0x1ab   : > { %v476_v6 = vpop.f32.mrb[5].mxu0 }
 0x1ac   : > { %v478_v7 = vpop.f32.mrb[6].mxu0  ;;  %v509_v8 = vmax.f32 %v474_v5, %v476_v6 }
 0x1ad   : > { %v480_v13 = vpop.f32.mrb[7].mxu0 }
 0x1ae   : > { %510 = vmax.xlane.f32.xlu0 %v509_v8  ;;  %v512_v15 = vmax.f32 %v478_v7, %v480_v13 }
 0x1b2   : > { %513 = vmax.xlane.f32.xlu0 %v512_v15  ;;  %v484_v17 = vpop.f32.mrb[8].mxu0 }
 0x1b3   : > { %v486_v19 = vpop.f32.mrb[9].mxu0 }
 0x1b4   : > { %v488_v21 = vpop.f32.mrb[10].mxu0  ;;  %v515_v22 = vmax.f32 %v484_v17, %v486_v19 }
 0x1b5   : > { %v490_v23 = vpop.f32.mrb[11].mxu0 }
 0x1b6   : > { %516 = vmax.xlane.f32.xlu1 %v515_v22  ;;  %v518_v24 = vmax.f32 %v488_v21, %v490_v23 }
 0x1b8   : > { %519 = vmax.xlane.f32.xlu0 %v518_v24 }
 0x1ba   : > { %v1321_v25 = vpop.f32.mrb[12].mxu0 }
 0x1bb   : > { %v1323_v26 = vpop.f32.mrb[13].mxu0 }
 0x1bc   : > { %v1325_v27 = vpop.f32.mrb[14].mxu0  ;;  %v521_v28 = vmax.f32 %v1321_v25, %v1323_v26 }
 0x1bd   : > { %v1329_v29 = vpop.f32.mrb[15].mxu0 }
 0x1be   : > { %v524_v30 = vmax.f32 %v1325_v27, %v1329_v29  ;;  %522 = vmax.xlane.f32.xlu1 %v521_v28 }
 0x1c0   : > { %525 = vmax.xlane.f32.xlu0 %v524_v30 }
 0x233   : > { %v505_v31 = vpop.xlane.xlu0 %504 }
 0x234   : > { %v527_v32 = vsub.f32 %v464_v62, %v505_v31  ;;  %v528_v33 = vsub.f32 %v466_v63, %v505_v31 }
 0x235   : > { %v508_v34 = vpop.xlane.xlu1 %507 }
 0x236   : > { %v543_v35 = vmul.f32 1.442695, %v527_v32  ;;  %v545_v36 = vmul.f32 1.442695, %v528_v33  ;;  %v529_v42 = vsub.f32 %v468_v1, %v508_v34  ;;  %v530_v43 = vsub.f32 %v470_v3, %v508_v34 }
 0x238   : > { %935 = vpow2.f32 %v543_v35  ;;  %v547_v45 = vmul.f32 1.442695, %v529_v42  ;;  %v549_v46 = vmul.f32 1.442695, %v530_v43 }
 0x239   : > { %937 = vpow2.f32 %v545_v36 }
 0x23a   : > { %939 = vpow2.f32 %v547_v45 }
 0x23b   : > { %941 = vpow2.f32 %v549_v46  ;;  %v511_v48 = vpop.xlane.xlu0 %510 }
 0x23c   : > { %v531_v49 = vsub.f32 %v474_v5, %v511_v48  ;;  %v532_v51 = vsub.f32 %v476_v6, %v511_v48 }
 0x23e   : > { %v551_v37 = vmul.f32 1.442695, %v531_v49  ;;  %v553_v39 = vmul.f32 1.442695, %v532_v51 }
 0x23f   : > { %v514_v38 = vpop.xlane.xlu0 %513 }
 0x240   : > { %943 = vpow2.f32 %v551_v37  ;;  %v533_v40 = vsub.f32 %v478_v7, %v514_v38  ;;  %v534_v52 = vsub.f32 %v480_v13, %v514_v38 }
 0x241   : > { %945 = vpow2.f32 %v553_v39 }
 0x242   : > { %v1333_v53 = vpop.eup %935  ;;  %v555_v54 = vmul.f32 1.442695, %v533_v40  ;;  %v557_v55 = vmul.f32 1.442695, %v534_v52 }
 0x243   : > { %v1335_v56 = vpop.eup %937  ;;  %v517_v47 = vpop.xlane.xlu1 %516 }
 0x244   : > { %v1337_v41 = vpop.eup %939  ;;  %947 = vpow2.f32 %v555_v54  ;;  %v535_v50 = vsub.f32 %v484_v17, %v517_v47  ;;  %v536_v44 = vsub.f32 %v486_v19, %v517_v47  ;;  %v575_v57 = vadd.f32 %v1335_v56, %v1333_v53 }
 0x245   : > { %v1341_v58 = vpop.eup %941  ;;  %949 = vpow2.f32 %v557_v55  ;;  %v520_v59 = vpop.xlane.xlu0 %519 }
 0x246   : > { %v559_v60 = vmul.f32 1.442695, %v535_v50  ;;  %v561_v61 = vmul.f32 1.442695, %v536_v44  ;;  %v537_v62 = vsub.f32 %v488_v21, %v520_v59  ;;  %v538_v63 = vsub.f32 %v490_v23, %v520_v59  ;;  %576 = vadd.xlane.f32.xlu1 %v575_v57 }
 0x247   : > { %v578_v1 = vadd.f32 %v1341_v58, %v1337_v41 }
 0x248   : > { %951 = vpow2.f32 %v559_v60  ;;  %v563_v2 = vmul.f32 1.442695, %v537_v62  ;;  %v565_v3 = vmul.f32 1.442695, %v538_v63 }
 0x249   : > { %953 = vpow2.f32 %v561_v61  ;;  %579 = vadd.xlane.f32.xlu0 %v578_v1 }
 0x24a   : > { %v1345_v4 = vpop.eup %943  ;;  %955 = vpow2.f32 %v563_v2 }
 0x24b   : > { %v946_v5 = vpop.eup %945  ;;  %957 = vpow2.f32 %v565_v3  ;;  %v523_v6 = vpop.xlane.xlu1 %522 }
 0x24c   : > { %v539_v7 = vsub.f32 %v1321_v25, %v523_v6  ;;  %v540_v8 = vsub.f32 %v1323_v26, %v523_v6  ;;  %v581_v13 = vadd.f32 %v946_v5, %v1345_v4 }
 0x24d   : > { %v526_v15 = vpop.xlane.xlu0 %525 }
 0x24e   : > { %v1350_v17 = vpop.eup %947  ;;  %v567_v19 = vmul.f32 1.442695, %v539_v7  ;;  %v569_v21 = vmul.f32 1.442695, %v540_v8  ;;  %582 = vadd.xlane.f32.xlu1 %v581_v13  ;;  %v541_v22 = vsub.f32 %v1325_v27, %v526_v15  ;;  %v542_v23 = vsub.f32 %v1329_v29, %v526_v15 }
 0x24f   : > { %v950_v24 = vpop.eup %949 }
 0x250   : > { %959 = vpow2.f32 %v567_v19  ;;  %v571_v28 = vmul.f32 1.442695, %v541_v22  ;;  %v573_v30 = vmul.f32 1.442695, %v542_v23  ;;  %v584_v25 = vadd.f32 %v950_v24, %v1350_v17 }
 0x251   : > { %961 = vpow2.f32 %v569_v21 }
 0x252   : > { %v952_v26 = vpop.eup %951  ;;  %963 = vpow2.f32 %v571_v28  ;;  %585 = vadd.xlane.f32.xlu0 %v584_v25 }
 0x253   : > { %v954_v31 = vpop.eup %953  ;;  %965 = vpow2.f32 %v573_v30 }
 0x254   : > { %v956_v32 = vpop.eup %955  ;;  %v587_v33 = vadd.f32 %v954_v31, %v952_v26 }
 0x255   : > { %v958_v34 = vpop.eup %957 }
 0x256   : > { %588 = vadd.xlane.f32.xlu1 %v587_v33  ;;  %v590_v35 = vadd.f32 %v958_v34, %v956_v32 }
 0x258   : > { %591 = vadd.xlane.f32.xlu0 %v590_v35 }
 0x25a   : > { %v1355_v27 = vpop.eup %959 }
 0x25b   : > { %v1357_v29 = vpop.eup %961 }
 0x25c   : > { %v1359_v36 = vpop.eup %963  ;;  %v593_v42 = vadd.f32 %v1357_v29, %v1355_v27 }
 0x25d   : > { %v1363_v43 = vpop.eup %965 }
 0x25e   : > { %594 = vadd.xlane.f32.xlu1 %v593_v42  ;;  %v596_v45 = vadd.f32 %v1363_v43, %v1359_v36 }
 0x260   : > { %597 = vadd.xlane.f32.xlu0 %v596_v45 }
 0x2d3   : > { %v577_v46 = vpop.xlane.xlu1 %576 }
 0x2d4   : > { %967 = vrcp.f32 %v577_v46 }
 0x2d6   : > { %v580_v48 = vpop.xlane.xlu0 %579 }
 0x2d7   : > { %969 = vrcp.f32 %v580_v48 }
 0x2db   : > { %v583_v49 = vpop.xlane.xlu1 %582 }
 0x2dc   : > { %971 = vrcp.f32 %v583_v49 }
 0x2de   : > { %v968_v51 = vpop.eup %967 }
 0x2df   : > { %v586_v37 = vpop.xlane.xlu0 %585  ;;  %v608_v38 = vmul.f32 %v968_v51, %v1335_v56  ;;  %v607_v52 = vmul.f32 %v968_v51, %v1333_v53  ;;  %v929_v51 = vld [vmem:[%s1448_s4] sm:$0xff]  }
 0x2e0   : > { %973 = vrcp.f32 %v586_v37 }
 0x2e1   : > { %v970_v39 = vpop.eup %969 }
 0x2e2   : > { %v610_v40 = vmul.f32 %v970_v39, %v1341_v58  ;;  %v609_v54 = vmul.f32 %v970_v39, %v1337_v41 }
 0x2e3   : > { %v589_v55 = vpop.xlane.xlu1 %588 }
 0x2e4   : > { %975 = vrcp.f32 %v589_v55  ;;  %v636_v47 = vadd.f32 %v610_v40, %v608_v38  ;;  %v654_v50 = vpack.c.bf16 %v610_v40, %v608_v38  ;;  %v623_v44 = vadd.f32 %v609_v54, %v607_v52 }
 0x2e5   : > { %v592_v57 = vpop.xlane.xlu0 %591  ;;  %v653_v59 = vpack.c.bf16 %v609_v54, %v607_v52 }
 0x2e6   : > { %v972_v60 = vpop.eup %971  ;;  %678 = vmatprep.subr.bf16.mxu1 %v654_v50  ;;  %977 = vrcp.f32 %v592_v57 }
 0x2e7   : > { %v612_v61 = vmul.f32 %v972_v60, %v946_v5  ;;  %679 = vmatpush1.bf16.msra.mxu1 %v653_v59  ;;  %v611_v56 = vmul.f32 %v972_v60, %v1345_v4 }
 0x2e9   : > { %v637_v62 = vadd.f32 %v636_v47, %v612_v61  ;;  %v624_v58 = vadd.f32 %v623_v44, %v611_v56 }
 0x2ea   : > { %v974_v63 = vpop.eup %973 }
 0x2eb   : > { %v595_v53 = vpop.xlane.xlu1 %594  ;;  %v614_v1 = vmul.f32 %v974_v63, %v950_v24  ;;  %v613_v41 = vmul.f32 %v974_v63, %v1350_v17 }
 0x2ec   : > { %979 = vrcp.f32 %v595_v53 }
 0x2ed   : > { %v598_v2 = vpop.xlane.xlu0 %597  ;;  %v638_v3 = vadd.f32 %v637_v62, %v614_v1  ;;  %v656_v6 = vpack.c.bf16 %v614_v1, %v612_v61  ;;  %v625_v7 = vadd.f32 %v624_v58, %v613_v41  ;;  %v655_v8 = vpack.c.bf16 %v613_v41, %v611_v56 }
 0x2ee   : > { %v976_v13 = vpop.eup %975  ;;  %981 = vrcp.f32 %v598_v2 }
 0x2ef   : > { %680 = vmatprep.subr.bf16.mxu1 %v656_v6  ;;  %v616_v5 = vmul.f32 %v976_v13, %v954_v31  ;;  %v615_v15 = vmul.f32 %v976_v13, %v952_v26 }
 0x2f0   : > { %v978_v19 = vpop.eup %977  ;;  %681 = vmatpush1.bf16.msra.mxu1 %v655_v8 }
 0x2f1   : > { %v618_v4 = vmul.f32 %v978_v19, %v958_v34  ;;  %v639_v21 = vadd.f32 %v638_v3, %v616_v5  ;;  %v617_v22 = vmul.f32 %v978_v19, %v956_v32  ;;  %v626_v23 = vadd.f32 %v625_v7, %v615_v15 }
 0x2f3   : > { %v640_v24 = vadd.f32 %v639_v21, %v618_v4  ;;  %v658_v28 = vpack.c.bf16 %v618_v4, %v616_v5  ;;  %v627_v17 = vadd.f32 %v626_v23, %v617_v22  ;;  %v657_v30 = vpack.c.bf16 %v617_v22, %v615_v15 }
 0x2f5   : > { %682 = vmatprep.subr.bf16.mxu1 %v658_v28 }
 0x2f6   : > { %v980_v25 = vpop.eup %979  ;;  %683 = vmatpush1.bf16.msra.mxu1 %v657_v30 }
 0x2f7   : > { %v620_v33 = vmul.f32 %v980_v25, %v1357_v29  ;;  %v619_v35 = vmul.f32 %v980_v25, %v1355_v27  ;;  %v930_v27 = vld [vmem:[%s1448_s4 + $0x8] sm:$0xff]  }
 0x2f8   : > { %v982_v42 = vpop.eup %981 }
 0x2f9   : > { %v622_v26 = vmul.f32 %v982_v42, %v1363_v43  ;;  %v641_v31 = vadd.f32 %v640_v24, %v620_v33  ;;  %v621_v34 = vmul.f32 %v982_v42, %v1359_v36  ;;  %v628_v45 = vadd.f32 %v627_v17, %v619_v35 }
 0x2fb   : > { %v642_v32 = vadd.f32 %v641_v31, %v622_v26  ;;  %v660_v46 = vpack.c.bf16 %v622_v26, %v620_v33  ;;  %v629_v48 = vadd.f32 %v628_v45, %v621_v34  ;;  %v659_v49 = vpack.c.bf16 %v621_v34, %v619_v35 }
 0x2fd   : > { %684 = vmatprep.subr.bf16.mxu1 %v660_v46  ;;  %v630_v29 = vrot.slane %v629_v48, 4  ;;  %v643_v36 = vrot.slane %v642_v32, 4 }
 0x2fe   : > { %685 = vmatpush1.bf16.msra.mxu1 %v659_v49 }
 0x2ff   : > { %v631_v43 = vadd.f32 %v630_v29, %v629_v48  ;;  %v644_v37 = vadd.f32 %v643_v36, %v642_v32 }
 0x301   : > { %863 = vmatmul.mubr.msk.bf16.vlgmr.msra.gmra.mrb[0].mxu1 %vm671_vm1, %v929_v51  ;;  %v632_v39 = vrot.slane %v631_v43, 2  ;;  %v645_v38 = vrot.slane %v644_v37, 2 }
 0x302   : > { %720 = vmatprep.mubr.bf16.mxu1 %v1088_v0 }
 0x303   : > { %v633_v40 = vadd.f32 %v632_v39, %v631_v43  ;;  %v646_v52 = vadd.f32 %v645_v38, %v644_v37 }
 0x305   : > { %v634_v54 = vrot.slane %v633_v40, 1  ;;  %v647_v55 = vrot.slane %v646_v52, 1 }
 0x307   : > { %v635_v47 = vadd.f32 %v634_v54, %v633_v40  ;;  %v648_v50 = vadd.f32 %v647_v55, %v646_v52 }
 0x309   : > { %864 = vmatmul.mubr.msk.bf16.gmra.mrb[4].mxu1 %vm671_vm1, %v930_v27  ;;  %983 = vrcp.f32 %v635_v47 }
 0x30a   : > { %985 = vrcp.f32 %v648_v50 }
 0x313   : > { %v984_v0 = vpop.eup %983 }
 0x314   : > { %v986_v57 = vpop.eup %985 }
 0x3d4   : > { %v712_v44 = vpop.f32.mrb[0].mxu1 }
 0x3d5   : > { %v733_v59 = vmul.f32 %v984_v0, %v712_v44  ;;  %v714_v60 = vpop.f32.mrb[1].mxu1 }
 0x3d6   : > { %v734_v61 = vmul.f32 %v986_v57, %v714_v60  ;;  %v716_v56 = vpop.f32.mrb[2].mxu1 }
 0x3d7   : > { %v741_v62 = vadd.f32 %v733_v59, %v1267_v9  ;;  %v735_v58 = vmul.f32 %v984_v0, %v716_v56  ;;  %v718_v63 = vpop.f32.mrb[3].mxu1 }
 0x3d8   : > { %v742_v53 = vadd.f32 %v734_v61, %v1273_v11  ;;  %v736_v1 = vmul.f32 %v986_v57, %v718_v63 }
 0x3d9   : > { %749 = vst [vmem:[%s242_s14] sm:$0xff] %v741_v62  ;;  %v743_v41 = vadd.f32 %v735_v58, %v1270_v10 }
 0x3da   : > { %750 = vst [vmem:[%s242_s14 + $0x8] sm:$0xff] %v742_v53  ;;  %v744_v2 = vadd.f32 %v736_v1, %v1276_v12 }
 0x3db   : > { %751 = vst [vmem:[%s242_s14 + $0x10] sm:$0xff] %v743_v41 }
 0x3dc   : > { %752 = vst [vmem:[%s242_s14 + $0x18] sm:$0xff] %v744_v2  ;;  %v722_v3 = vpop.f32.mrb[4].mxu1 }
 0x3dd   : > { %v737_v6 = vmul.f32 %v984_v0, %v722_v3  ;;  %v724_v9 = vpop.f32.mrb[5].mxu1 }
 0x3de   : > { %v738_v7 = vmul.f32 %v986_v57, %v724_v9  ;;  %v726_v8 = vpop.f32.mrb[6].mxu1 }
 0x3df   : > { %v745_v11 = vadd.f32 %v737_v6, %v1281_v14  ;;  %v739_v13 = vmul.f32 %v984_v0, %v726_v8  ;;  %v728_v5 = vpop.f32.mrb[7].mxu1 }
 0x3e0   : > { %v746_v10 = vadd.f32 %v738_v7, %v1286_v16  ;;  %v740_v12 = vmul.f32 %v986_v57, %v728_v5 }
 0x3e1   : > { %753 = vst [vmem:[%s242_s14 + $0x20] sm:$0xff] %v745_v11  ;;  %v747_v15 = vadd.f32 %v739_v13, %v1290_v18 }
 0x3e2   : > { %754 = vst [vmem:[%s242_s14 + $0x28] sm:$0xff] %v746_v10  ;;  %v748_v14 = vadd.f32 %v740_v12, %v1294_v20 }
 0x3e3   : > { %755 = vst [vmem:[%s242_s14 + $0x30] sm:$0xff] %v747_v15 }
 0x3e4   : > { %756 = vst [vmem:[%s242_s14 + $0x38] sm:$0xff] %v748_v14 }
 0x3e5   : > { %1030 = shalt.err (!%p1027_p2)
}
 0x3e6   : > { %s1031_s11 = scalar_lea.hbm %s1399_s22, 1024  ;;  %s1035_s26 = scalar_lea.hbm %s1449_s5, 2048 }
 0x3e7   : > { %p1032_p4 = scmp.ne.s32.totalorder %s1399_s22, %s1031_s11  ;;  %p1036_p9 = scmp.lt.u32.totalorder %s1399_s22, %s1449_s5 }
 0x3e8   : > { %p1037_p1 = scmp.lt.u32.totalorder %s1035_s26, %s1031_s11  ;;  %p1039_p6 = scmp.lt.u32.totalorder %s1031_s11, %s1399_s22 }
 0x3e9   : > { %p1033_p5 = pnand %p1032_p4, %p1456_p11 }
 0x3ea   : > { %p1038_p3 = por %p1037_p1, %p1036_p9 }
 0x3eb   : > { %p1034_p7 = pneg %p1033_p5 }
 0x3ec   : > { %p1040_p12 = por %p1039_p6, %p1038_p3 }
 0x3ee   : > { %p1041_p13 = pnand %p1040_p12, %p1034_p7 }
 0x3f0   : > { %1044 = shalt.err (!%p1041_p13)
}
 0x3f1   : > { %s1090_s28 = smov 256   ;;  %s1091_s25 = smov 16  }
 0x3f2   : > { %874 = dma.vmem_to_hbm [thread:$0]  (%p1456_p11), %s1392_s15, 1024, %s1399_s22, %s758_s29, %s1090_s28, %s1090_s28, %s1091_s25  }
 0x3f3 PF: > { %s786_s16 = sand.u32 1, %s1071_s18   ;;  %p1457_p8 = scmp.ne.s32.totalorder %s1454_s6, 0 }
 0x3f4   : > { %p1458_p10 = scmp.ge.s32.totalorder %s1083_s21, 2  ;;  %s787_s8 = scalar_lea.sflag [#allocation4], %s786_s16 }
 0x3f6   : > { %p881_p0 = pnand %p1458_p10, %p1457_p8 }
 0x3f8   : > { %1066 = dma.done.wait (!%p881_p0), %s787_s8, 1024  }
 0x3f9   : > { %1068 = vsyncadd (!%p881_p0), %s787_s8, 4294966272  ;;  %p18_p2 = scmp.ge.s32.totalorder %s1147_s24, 4   ;;  %s1459_s18 = smov %s1075_s19 }
 0x3fa   : > { %s1460_s19 = smov %s1079_s20  ;;  %s1461_s20 = smov %s1159_s27 }
 0x3fb   : > { %s1462_s21 = smov %s1147_s24  ;;  %20 = sbr.rel (!%p18_p2) target bundleno = 5 (0x5), region = 85 }
 0x402   :  { %792 = vsyncpa [#allocation3], 1 }
 0x403   :  { %794 = vsyncpa [#allocation3 + $0x1], 1 }
 0x404   :  { %795 = vsyncpa [#allocation4], 1 }
 0x405   :  { %797 = vsyncpa [#allocation4 + $0x1], 1 }

</bundles_post_ra>
